<compile_context>
chip_gen: v7x
topology: tpu7x:2x2x1
jax: 0.10.0
libtpu: 0.0.40
codegen_flags: <defaults>
</compile_context>

<pallas_src>
import functools

import jax
import jax.numpy as jnp
from jax import lax
from jax.experimental import pallas as pl
from jax.experimental.pallas import tpu as pltpu


def _round_up(x, m):
    return ((x + m - 1) // m) * m


def _iou_tile(a, b, img_h, img_w, n_gt):
    """IoU tile (R_pad, TS) with outside anchors and padded gt rows forced to -1.

    Returns (iou, inside, anchor coord rows, gt coord cols).  Both passes call
    this with identical inputs so the values are bit-identical, which keeps the
    `iou == gt_max` tie detection in pass 2 consistent with pass 1.
    """
    ay1, ax1, ay2, ax2 = a[0:1, :], a[1:2, :], a[2:3, :], a[3:4, :]   # (1, TS)
    by1, bx1, by2, bx2 = b[:, 0:1], b[:, 1:2], b[:, 2:3], b[:, 3:4]   # (R_pad, 1)

    inside = (ay1 >= 0.0) & (ax1 >= 0.0) & (ay2 <= img_h) & (ax2 <= img_w)  # (1,TS)
    row_valid = lax.broadcasted_iota(jnp.int32, (b.shape[0], 1), 0) < n_gt  # (R_pad,1)

    ih = jnp.maximum(jnp.minimum(by2, ay2) - jnp.maximum(by1, ay1), 0.0)
    iw = jnp.maximum(jnp.minimum(bx2, ax2) - jnp.maximum(bx1, ax1), 0.0)
    area_i = ih * iw                                                    # (R_pad, TS)
    area_a = (ay2 - ay1) * (ax2 - ax1)                                  # (1, TS)
    area_b = (by2 - by1) * (bx2 - bx1)                                  # (R_pad, 1)
    union = area_a + area_b - area_i
    iou = area_i * pl.reciprocal(union, approx=True)                    # (R_pad, TS)
    # Only inside anchors and real gt boxes participate (matches anchor[inside_index]).
    iou = jnp.where(inside & row_valid, iou, -1.0)
    return iou, inside, (ay1, ax1, ay2, ax2), (by1, bx1, by2, bx2)


def _gt_max_kernel(img_ref, anchor_ref, bbox_ref, gtmax_ref, *, n_gt):
    """Pass 1: accumulate per-gt max IoU over all anchor tiles."""
    @pl.when(pl.program_id(0) == 0)
    def _():
        gtmax_ref[...] = jnp.full_like(gtmax_ref, -1.0)

    iou, _, _, _ = _iou_tile(anchor_ref[...], bbox_ref[...],
                             img_ref[0], img_ref[1], n_gt)
    gtmax_ref[...] = jnp.maximum(gtmax_ref[...],
                                 jnp.max(iou, axis=1, keepdims=True))


def _label_loc_kernel(img_ref, anchor_ref, bbox_ref, gtmax_ref,
                      label_ref, loc_ref, *,
                      n_gt, pos_iou_thresh, neg_iou_thresh):
    """Pass 2: per-tile labels and bbox2loc regression targets."""
    iou, inside, (ay1, ax1, ay2, ax2), (by1, bx1, by2, bx2) = _iou_tile(
        anchor_ref[...], bbox_ref[...], img_ref[0], img_ref[1], n_gt)
    r_pad = iou.shape[0]

    # per-anchor max / argmax over gt boxes  (torch: ious.max(dim=1))
    r_iota = lax.broadcasted_iota(jnp.int32, iou.shape, 0)              # (R_pad, TS)
    max_ious = jnp.max(iou, axis=0, keepdims=True)                      # (1, TS)
    argmax_ious = jnp.min(jnp.where(iou == max_ious, r_iota, r_pad),
                          axis=0, keepdims=True)                        # (1, TS)

    # anchors achieving the per-gt max (torch: ious == gt_max_ious); padded gt
    # rows are given an impossible value so they can never match.
    row_valid = lax.broadcasted_iota(jnp.int32, (r_pad, 1), 0) < n_gt
    gt_safe = jnp.where(row_valid, gtmax_ref[...], 2.0)                 # (R_pad, 1)
    gt_eq = jnp.max(jnp.where(iou == gt_safe, 1, 0).astype(jnp.int32),
                    axis=0, keepdims=True) > 0                          # (1, TS)

    # --- labels: same overwrite order as the reference torch module -----------
    # (gt-argmax -> 1, then max >= pos_thresh -> 1, then max < neg_thresh -> 0)
    label = jnp.full(max_ious.shape, -1, dtype=jnp.int32)
    label = jnp.where(gt_eq, 1, label)
    label = jnp.where(max_ious >= pos_iou_thresh, 1, label)
    label = jnp.where(max_ious < neg_iou_thresh, 0, label)
    label_ref[...] = jnp.where(inside, label, -1)

    # --- gather matched gt box per anchor (one-hot over the small gt axis) ----
    onehot = (r_iota == argmax_ious).astype(jnp.float32)                # (R_pad, TS)
    gby1 = jnp.sum(onehot * by1, axis=0, keepdims=True)
    gbx1 = jnp.sum(onehot * bx1, axis=0, keepdims=True)
    gby2 = jnp.sum(onehot * by2, axis=0, keepdims=True)
    gbx2 = jnp.sum(onehot * bx2, axis=0, keepdims=True)

    # --- cvt_bbox_to_location (bbox2loc), stored row-by-row --------------------
    eps = jnp.float32(jnp.finfo(jnp.float32).eps)
    hgt = ay2 - ay1
    wid = ax2 - ax1
    inv_ha = pl.reciprocal(jnp.maximum(hgt, eps), approx=True)
    inv_wa = pl.reciprocal(jnp.maximum(wid, eps), approx=True)
    cya = ay1 + 0.5 * hgt
    cxa = ax1 + 0.5 * wid
    hb = gby2 - gby1
    wb = gbx2 - gbx1
    cyb = gby1 + 0.5 * hb
    cxb = gbx1 + 0.5 * wb
    zero = jnp.zeros_like(max_ious)
    loc_ref[0:1, :] = jnp.where(inside, (cyb - cya) * inv_ha, zero)     # dy
    loc_ref[1:2, :] = jnp.where(inside, (cxb - cxa) * inv_wa, zero)     # dx
    loc_ref[2:3, :] = jnp.where(inside, jnp.log(hb * inv_ha), zero)     # dh
    loc_ref[3:4, :] = jnp.where(inside, jnp.log(wb * inv_wa), zero)     # dw


def anchor_target_creator(anchor, bbox, img_size, key,
                          n_sample=256, pos_iou_thresh=0.7,
                          neg_iou_thresh=0.3, pos_ratio=0.5,
                          tile_s=2048):
    """Returns (anchor_locations [S,4] f32, anchor_labels [S] i32)."""
    anchor = jnp.asarray(anchor, jnp.float32)
    bbox = jnp.asarray(bbox, jnp.float32)
    S = anchor.shape[0]
    R = bbox.shape[0]

    # --- padding: anchors to a multiple of the lane tile, gt boxes to 8 rows ----
    TS = max(128, min(_round_up(tile_s, 128), _round_up(S, 128)))
    S_pad = _round_up(S, TS)
    R_pad = _round_up(R, 8)
    num_tiles = S_pad // TS

    anchor_p = anchor
    if S_pad != S:
        # padded anchors are "outside" (y1 = -1 < 0) -> label -1, loc 0
        anchor_p = jnp.pad(anchor, ((0, S_pad - S), (0, 0)), constant_values=-1.0)
    anchor_t = anchor_p.T                                 # (4, S_pad)

    bbox_p = bbox
    if R_pad != R:
        # dummy gt boxes with non-zero height/width; masked out inside the kernel
        pad_rows = jnp.tile(jnp.asarray([[0.0, 0.0, 1.0, 1.0]], jnp.float32),
                            (R_pad - R, 1))
        bbox_p = jnp.concatenate([bbox, pad_rows], axis=0)

    img = jnp.asarray(img_size, jnp.float32)              # (2,) = (h, w)

    # --- pass 1: per-gt max IoU over all (inside) anchors -----------------------
    gtmax_kernel = functools.partial(_gt_max_kernel, n_gt=R)
    gt_max = pl.pallas_call(
        gtmax_kernel,
        out_shape=jax.ShapeDtypeStruct((R_pad, 1), jnp.float32),
        grid_spec=pltpu.PrefetchScalarGridSpec(
            num_scalar_prefetch=0,
            grid=(num_tiles,),
            in_specs=[
                pl.BlockSpec(memory_space=pltpu.MemorySpace.SMEM),   # img (h, w)
                pl.BlockSpec((4, TS), lambda t: (0, t)),             # anchor tile
                pl.BlockSpec((R_pad, 4), lambda t: (0, 0)),          # gt boxes (pinned)
            ],
            out_specs=pl.BlockSpec((R_pad, 1), lambda t: (0, 0)),    # resident accum
        ),
        compiler_params=pltpu.CompilerParams(
            dimension_semantics=("arbitrary",)),
    )(img, anchor_t, bbox_p)

    # --- pass 2: labels + bbox2loc per anchor tile ------------------------------
    ll_kernel = functools.partial(_label_loc_kernel,
                                  n_gt=R,
                                  pos_iou_thresh=float(pos_iou_thresh),
                                  neg_iou_thresh=float(neg_iou_thresh))
    cost = pl.CostEstimate(
        flops=int(40 * R_pad * S_pad),
        transcendentals=int(R_pad * S_pad + 6 * S_pad),
        bytes_accessed=int(4 * (9 * S_pad + 5 * R_pad)),
    )
    label2d, loc2d = pl.pallas_call(
        ll_kernel,
        out_shape=(jax.ShapeDtypeStruct((1, S_pad), jnp.int32),
                   jax.ShapeDtypeStruct((4, S_pad), jnp.float32)),
        grid_spec=pltpu.PrefetchScalarGridSpec(
            num_scalar_prefetch=0,
            grid=(num_tiles,),
            in_specs=[
                pl.BlockSpec(memory_space=pltpu.MemorySpace.SMEM),   # img (h, w)
                pl.BlockSpec((4, TS), lambda t: (0, t)),             # anchor tile
                pl.BlockSpec((R_pad, 4), lambda t: (0, 0)),          # gt boxes (pinned)
                pl.BlockSpec((R_pad, 1), lambda t: (0, 0)),          # gt_max (pinned)
            ],
            out_specs=(
                pl.BlockSpec((1, TS), lambda t: (0, t)),             # labels
                pl.BlockSpec((4, TS), lambda t: (0, t)),             # locations
            ),
        ),
        compiler_params=pltpu.CompilerParams(
            dimension_semantics=("parallel",)),                      # 2 TCs on v7x
        cost_estimate=cost,
    )(img, anchor_t, bbox_p, gt_max)

    label = label2d[0, :S]                                # (S,) int32
    loc = loc2d[:, :S].T                                  # (S, 4) rows dy,dx,dh,dw

    # --- random sub-sampling of pos/neg labels (glue, matches torch semantics) --
    # TODO(synk): torch.randperm ordering cannot be bit-matched; a random subset
    #             of the same size is kept instead (identical semantics).
    n_pos = int(pos_ratio * n_sample)
    k_pos, k_neg = jax.random.split(key)

    pos_mask = label == 1
    k1 = min(n_pos, S)
    pos_scores = jnp.where(pos_mask, jax.random.uniform(k_pos, (S,)), -jnp.inf)
    pvals, pidx = lax.top_k(pos_scores, k1)
    pos_keep = jnp.zeros((S,), jnp.bool_).at[pidx].set(pvals > -jnp.inf)
    label = jnp.where(pos_mask & ~pos_keep, -1, label)

    n_neg = n_sample - jnp.sum(label == 1)
    neg_mask = label == 0
    k2 = min(n_sample, S)
    neg_scores = jnp.where(neg_mask, jax.random.uniform(k_neg, (S,)), -jnp.inf)
    nvals, nidx = lax.top_k(neg_scores, k2)
    nkeep_sel = (jnp.arange(k2) < n_neg) & (nvals > -jnp.inf)
    neg_keep = jnp.zeros((S,), jnp.bool_).at[nidx].set(nkeep_sel)
    label = jnp.where(neg_mask & ~neg_keep, -1, label)

    return loc, label


if __name__ == "__main__":
    key = jax.random.PRNGKey(0)
    k1, k2, k3, k4 = jax.random.split(key, 4)

    S, R = 256, 8
    img_h, img_w = 64.0, 64.0

    # anchors (y1, x1, y2, x2): some inside, some crossing image borders
    ctr = jax.random.uniform(k1, (S, 2), minval=-8.0, maxval=72.0)
    half = jax.random.uniform(k2, (S, 2), minval=2.0, maxval=12.0)
    anchor = jnp.concatenate([ctr - half, ctr + half], axis=1)

    # gt boxes fully inside the image
    gctr = jax.random.uniform(k3, (R, 2), minval=12.0, maxval=52.0)
    ghalf = jnp.full((R, 2), 8.0)
    bbox = jnp.concatenate([gctr - ghalf, gctr + ghalf], axis=1)

    # tile_s=128 -> two S tiles, exercising both the reduction pass accumulation
    # and the parallel label/loc pass.
    loc, label = anchor_target_creator(anchor, bbox, (img_h, img_w), key=k4,
                                       tile_s=128)
    jax.block_until_ready((loc, label))

    assert loc.shape == (S, 4) and loc.dtype == jnp.float32
    assert label.shape == (S,) and label.dtype == jnp.int32
    assert bool(jnp.isfinite(loc).all())
    assert bool(jnp.all((label >= -1) & (label <= 1)))
    assert int(jnp.sum(label == 1)) <= 128
    assert int(jnp.sum(label >= 0)) <= 256
    print("KERNEL_OK")
</pallas_src>

<mosaic_0001>
module attributes {stable_mosaic.version = 11 : i64} {
  func.func @_gt_max_kernel(%arg0: i32, %arg1: memref<2xf32, #tpu.memory_space<smem>>, %arg2: memref<4x128xf32, #tpu.memory_space<vmem>>, %arg3: memref<8x4xf32, #tpu.memory_space<vmem>>, %arg4: memref<8x1xf32, #tpu.memory_space<vmem>>) attributes {dimension_semantics = [#tpu.dimension_semantics<arbitrary>], iteration_bounds = array<i64: 2>, scalar_prefetch = 0 : i64, scratch_operands = 0 : i64, tpu.core_type = #tpu.core_type<tc>, window_params = [{transform_indices = @transform_0, window_bounds = array<i64: 2>}, {transform_indices = @transform_1, window_bounds = array<i64: 4, 128>}, {pipeline_mode = #tpu.pipeline_mode<synchronous>, transform_indices = @transform_2, window_bounds = array<i64: 8, 4>}, {pipeline_mode = #tpu.pipeline_mode<synchronous>, transform_indices = @transform_3, window_bounds = array<i64: 8, 1>}]} {
    %c0_i32 = arith.constant 0 : i32
    %0 = arith.cmpi eq, %arg0, %c0_i32 : i32
    %1 = arith.extui %0 : i1 to i32
    %c0_i32_0 = arith.constant 0 : i32
    %2 = arith.cmpi ne, %1, %c0_i32_0 : i32
    scf.if %2 {
      %cst_14 = arith.constant -1.000000e+00 : f32
      %70 = vector.broadcast %cst_14 : f32 to vector<8x1xf32>
      %c0_15 = arith.constant 0 : index
      %c0_16 = arith.constant 0 : index
      %71 = vector.load %arg4[%c0_15, %c0_16] : memref<8x1xf32, #tpu.memory_space<vmem>>, vector<8x1xf32>
      tpu.vector_store %arg4[%c0_15, %c0_16], %70 {strides = array<i32>} : memref<8x1xf32, #tpu.memory_space<vmem>>, vector<8x1xf32>,
    } else {
    }
    %c0 = arith.constant 0 : index
    %c0_1 = arith.constant 0 : index
    %3 = vector.load %arg2[%c0, %c0_1] : memref<4x128xf32, #tpu.memory_space<vmem>>, vector<4x128xf32>
    %c0_2 = arith.constant 0 : index
    %c0_3 = arith.constant 0 : index
    %4 = vector.load %arg3[%c0_2, %c0_3] : memref<8x4xf32, #tpu.memory_space<vmem>>, vector<8x4xf32>
    %c0_4 = arith.constant 0 : index
    %5 = memref.load %arg1[%c0_4] : memref<2xf32, #tpu.memory_space<smem>>
    %c1 = arith.constant 1 : index
    %6 = memref.load %arg1[%c1] : memref<2xf32, #tpu.memory_space<smem>>
    %7 = vector.extract_strided_slice %3 {offsets = [0, 0], sizes = [1, 128], strides = [1, 1]} : vector<4x128xf32> to vector<1x128xf32>
    %8 = vector.extract_strided_slice %3 {offsets = [1, 0], sizes = [1, 128], strides = [1, 1]} : vector<4x128xf32> to vector<1x128xf32>
    %9 = vector.extract_strided_slice %3 {offsets = [2, 0], sizes = [1, 128], strides = [1, 1]} : vector<4x128xf32> to vector<1x128xf32>
    %10 = vector.extract_strided_slice %3 {offsets = [3, 0], sizes = [1, 128], strides = [1, 1]} : vector<4x128xf32> to vector<1x128xf32>
    %11 = vector.extract_strided_slice %4 {offsets = [0, 0], sizes = [8, 1], strides = [1, 1]} : vector<8x4xf32> to vector<8x1xf32>
    %12 = vector.extract_strided_slice %4 {offsets = [0, 1], sizes = [8, 1], strides = [1, 1]} : vector<8x4xf32> to vector<8x1xf32>
    %13 = vector.extract_strided_slice %4 {offsets = [0, 2], sizes = [8, 1], strides = [1, 1]} : vector<8x4xf32> to vector<8x1xf32>
    %14 = vector.extract_strided_slice %4 {offsets = [0, 3], sizes = [8, 1], strides = [1, 1]} : vector<8x4xf32> to vector<8x1xf32>
    %cst = arith.constant 0.000000e+00 : f32
    %15 = vector.broadcast %cst : f32 to vector<1x128xf32>
    %16 = arith.cmpf oge, %7, %15 : vector<1x128xf32>
    %cst_5 = arith.constant 0.000000e+00 : f32
    %17 = vector.broadcast %cst_5 : f32 to vector<1x128xf32>
    %18 = arith.cmpf oge, %8, %17 : vector<1x128xf32>
    %19 = arith.andi %16, %18 : vector<1x128xi1>
    %20 = vector.broadcast %5 : f32 to vector<1x128xf32>
    %21 = arith.cmpf ole, %9, %20 : vector<1x128xf32>
    %22 = arith.andi %19, %21 : vector<1x128xi1>
    %23 = vector.broadcast %6 : f32 to vector<1x128xf32>
    %24 = arith.cmpf ole, %10, %23 : vector<1x128xf32>
    %25 = arith.andi %22, %24 : vector<1x128xi1>
    %26 = tpu.iota {dimensions = array<i32: 0>} : vector<8x1xi32>
    %c8_i32 = arith.constant 8 : i32
    %27 = vector.broadcast %c8_i32 : i32 to vector<8x1xi32>
    %28 = arith.cmpi slt, %26, %27 : vector<8x1xi32>
    %29 = vector.broadcast %13 : vector<8x1xf32> to vector<8x128xf32>
    %30 = vector.broadcast %9 : vector<1x128xf32> to vector<8x128xf32>
    %31 = arith.minimumf %29, %30 : vector<8x128xf32>
    %32 = vector.broadcast %11 : vector<8x1xf32> to vector<8x128xf32>
    %33 = vector.broadcast %7 : vector<1x128xf32> to vector<8x128xf32>
    %34 = arith.maximumf %32, %33 : vector<8x128xf32>
    %35 = arith.subf %31, %34 : vector<8x128xf32>
    %cst_6 = arith.constant 0.000000e+00 : f32
    %36 = vector.broadcast %cst_6 : f32 to vector<8x128xf32>
    %37 = arith.maximumf %35, %36 : vector<8x128xf32>
    %38 = vector.broadcast %14 : vector<8x1xf32> to vector<8x128xf32>
    %39 = vector.broadcast %10 : vector<1x128xf32> to vector<8x128xf32>
    %40 = arith.minimumf %38, %39 : vector<8x128xf32>
    %41 = vector.broadcast %12 : vector<8x1xf32> to vector<8x128xf32>
    %42 = vector.broadcast %8 : vector<1x128xf32> to vector<8x128xf32>
    %43 = arith.maximumf %41, %42 : vector<8x128xf32>
    %44 = arith.subf %40, %43 : vector<8x128xf32>
    %cst_7 = arith.constant 0.000000e+00 : f32
    %45 = vector.broadcast %cst_7 : f32 to vector<8x128xf32>
    %46 = arith.maximumf %44, %45 : vector<8x128xf32>
    %47 = arith.mulf %37, %46 : vector<8x128xf32>
    %48 = arith.subf %9, %7 : vector<1x128xf32>
    %49 = arith.subf %10, %8 : vector<1x128xf32>
    %50 = arith.mulf %48, %49 : vector<1x128xf32>
    %51 = arith.subf %13, %11 : vector<8x1xf32>
    %52 = arith.subf %14, %12 : vector<8x1xf32>
    %53 = arith.mulf %51, %52 : vector<8x1xf32>
    %54 = vector.broadcast %50 : vector<1x128xf32> to vector<8x128xf32>
    %55 = vector.broadcast %53 : vector<8x1xf32> to vector<8x128xf32>
    %56 = arith.addf %54, %55 : vector<8x128xf32>
    %57 = arith.subf %56, %47 : vector<8x128xf32>
    %58 = tpu.reciprocal %57 {approx = true} : vector<8x128xf32> -> vector<8x128xf32>
    %59 = arith.mulf %47, %58 : vector<8x128xf32>
    %60 = vector.broadcast %25 : vector<1x128xi1> to vector<8x128xi1>
    %61 = vector.broadcast %28 : vector<8x1xi1> to vector<8x128xi1>
    %62 = arith.andi %60, %61 : vector<8x128xi1>
    %cst_8 = arith.constant -1.000000e+00 : f32
    %63 = vector.broadcast %cst_8 : f32 to vector<8x128xf32>
    %64 = arith.select %62, %59, %63 : vector<8x128xi1>, vector<8x128xf32>
    %c0_9 = arith.constant 0 : index
    %c0_10 = arith.constant 0 : index
    %65 = vector.load %arg4[%c0_9, %c0_10] : memref<8x1xf32, #tpu.memory_space<vmem>>, vector<8x1xf32>
    %cst_11 = arith.constant dense<0xFF800000> : vector<8xf32>
    %66 = vector.multi_reduction <maximumf>, %64, %cst_11 [1] : vector<8x128xf32> to vector<8xf32>
    %67 = vector.shape_cast %66 : vector<8xf32> to vector<8x1xf32>
    %68 = arith.maximumf %65, %67 : vector<8x1xf32>
    %c0_12 = arith.constant 0 : index
    %c0_13 = arith.constant 0 : index
    %69 = vector.load %arg4[%c0_12, %c0_13] : memref<8x1xf32, #tpu.memory_space<vmem>>, vector<8x1xf32>
    tpu.vector_store %arg4[%c0_12, %c0_13], %68 {strides = array<i32>} : memref<8x1xf32, #tpu.memory_space<vmem>>, vector<8x1xf32>,
    return
  }
  func.func @transform_0(%arg0: i32) -> i32 {
    %c0_i32 = arith.constant 0 : i32
    %c0_i32_0 = arith.constant 0 : i32
    return %c0_i32 : i32
  }
  func.func @transform_1(%arg0: i32) -> (i32, i32) {
    %c0_i32 = arith.constant 0 : i32
    %c0_i32_0 = arith.constant 0 : i32
    return %c0_i32, %arg0 : i32, i32
  }
  func.func @transform_2(%arg0: i32) -> (i32, i32) {
    %c0_i32 = arith.constant 0 : i32
    %c0_i32_0 = arith.constant 0 : i32
    %c0_i32_1 = arith.constant 0 : i32
    return %c0_i32, %c0_i32_0 : i32, i32
  }
  func.func @transform_3(%arg0: i32) -> (i32, i32) {
    %c0_i32 = arith.constant 0 : i32
    %c0_i32_0 = arith.constant 0 : i32
    %c0_i32_1 = arith.constant 0 : i32
    return %c0_i32, %c0_i32_0 : i32, i32
  }
}

</mosaic_0001>

<bundles_post_ra>
// kernel: tpu_custom_call.1
= control target key start
LH: loop header
LB: loop body
LE: loop exit
PB: predicated region body
PF: predicated region fallthrough
CT: control target
= control target key end

     0   :  { %8 = vsyncpa [#allocation3], 0  ;;  %s425_s12 = smov 0   ;;  %s486_s0 = inlined_call_operand.vmem [shape: f32[2], index: 0, kind: input, shape index: {}]   ;;  %s487_s1 = inlined_call_operand.vmem [shape: f32[4,256], index: 1, kind: input, shape index: {}]   ;;  %s488_s2 = inlined_call_operand.vmem [shape: f32[8,4], index: 2, kind: input, shape index: {}]   ;;  %s489_s3 = inlined_call_operand.vmem [shape: f32[8,1], index: 3, kind: output, shape index: {}]  }
   0x1 LB: > { %s431_s13 = sadd.s32 4294967295, %s395_s12   ;;  %p326_p0 = scmp.ge.s32.totalorder %s395_s12, 1  ;;  %s395_s12 = sphi %s425_s12, %s14_s12  }
   0x2   : > { %p108_p1 = scmp.lt.s32.totalorder %s395_s12, 3  ;;  %s121_s16 = sshll.u32 %s486_s0, 4  ;;  %s122_s16 = int_to_ptr.vmem [resolvable:$true] %s121_s16 }
   0x3   : > { %p344_p4 = scmp.eq.s32.totalorder %s431_s13, 0  ;;  %s370_s18 = scalar_lea.vmem %s122_s16, 16 }
   0x4   : > { %p439_p3 = pnand %p326_p0, %p108_p1  ;;  %p371_p7 = scmp.ne.s32.totalorder %s122_s16, %s370_s18 }
   0x5   : > { %p378_p11 = scmp.lt.s32.totalorder %s122_s16, %s122_s16  ;;  %p379_p12 = scmp.lt.s32.totalorder %s370_s18, %s370_s18 }
   0x6   : > { %p340_p5 = pneg %p439_p3 }
   0x7   : > { %p380_p13 = por %p379_p12, %p378_p11 }
   0x8   : > { %p341_p6 = pnand %p344_p4, %p340_p5 }
   0xa   : > { %p372_p8 = pneg %p341_p6 }
   0xc   : > { %p373_p9 = pnand %p372_p8, %p371_p7 }
   0xe   : > { %p374_p10 = pneg %p373_p9 }
  0x10   : > { %p381_p2 = pnand %p380_p13, %p374_p10 }
  0x12   : > { %384 = shalt.err (!%p381_p2)
}
  0x13   : > { %s397_s19 = smov [#allocation2]   ;;  %144 = sbr.rel (%p439_p3) target bundleno = 565 (0x235), region = 32 }
  0x14   : > { %343 = dma.vmem_to_smem (!%p341_p6), %s122_s16, 16, %s397_s19, [#allocation3]  }
  0x1a   : > { %390 = dma.done.wait (%p344_p4), [#allocation3], 16  }
  0x1b   : > { %392 = vsyncadd (%p344_p4), [#allocation3], 4294967280 }
  0x1c   : > { %150 = sfence }
  0x1d   : > { %p163_p0 = scmp.lt.s32.totalorder %s431_s13, 1  ;;  %p491_p1 = scmp.ne.s32.totalorder %s431_s13, 0 }
  0x1e   : > { %vm171_vm0 = vcmask (!%p491_p1), 7168   ;;  %v398_v0 = vmov (!%p491_p1), -1.0  }
  0x1f   : > { %s164_s20 = scalar_select %p163_p0, %s431_s13, 1 }
  0x20   : > { %170 = sbr.rel (%p491_p1) target bundleno = 39 (0x27), region = 40  ;;  %172 = vst.msk [vmem:[%s489_s3] sm:$0xff] (!%p491_p1), %vm171_vm0, %v398_v0 }
  0x21   : > { %s331_s21 = sshll.u32 %s164_s20, 2 }
  0x22   : > { %s459_s24 = scalar_lea.vmem %s487_s1, %s331_s21 }
  0x27 PF: > { %v174_v1 = vld [vmem:[%s488_s2] sm:$0xff]  ;;  %s399_s29 = smov 2   ;;  %v400_v2 = vmov 2   ;;  %v401_v3 = vmov 3   ;;  %v402_v4 = vmov 0   ;;  %v403_v5 = vmov 1  }
  0x28   : > { %247 = vrot.lane.b32.xlu0 %v174_v1, %s399_s29  ;;  %362 = vset.pattern.permute.xlu1 %v400_v2  ;;  %s404_s30 = smov 127   ;;  %v202_v10 = vlaneseq  ;;  %s175_s4 = sld [smem:[#allocation2]]  ;;  %v173_v13 = vld [vmem:[%s459_s24] sm:$0xf]  ;;  %vm283_vm11 = vcmask 7168  }
  0x29   : > { %199 = vperm.xlu1 %362, %v174_v1   ;;  %364 = vset.pattern.permute.xlu0 %v401_v3  ;;  %v240_v18 = vrot.slane %v173_v13, 6  ;;  %s333_s5 = sld [smem:[#allocation2 + $0x1]]  ;;  %vm177_vm1 = vcmp.ge.f32.partialorder %v173_v13, 0.0  ;;  %v279_v55 = vld [vmem:[%s489_s3] sm:$0xff] }
  0x2a   : > { %v203_v12 = vshrl.u32 %v202_v10, 7  ;;  %v178_v33 = vsel %vm177_vm1, 1, %v402_v4 }
  0x2b   : > { %v242_v23 = vsub.f32 %v173_v13, %v240_v18  ;;  %v179_v35 = vrot.slane %v178_v33, 1 }
  0x2c   : > { %v204_v15 = vsub.s32 2, %v203_v12  ;;  %v213_v16 = vsub.s32 0, %v203_v12  ;;  %v233_v17 = vsub.s32 1, %v203_v12  ;;  %v224_v19 = vsub.s32 3, %v203_v12 }
  0x2d   : > { %363 = vset.pattern.permute.xlu1 %v402_v4  ;;  %v244_v31 = vrot.slane %v242_v23, 1  ;;  %vm180_vm4 = vcmp.ne.s32.totalorder %v179_v35, 0 }
  0x2e   : > { %208 = vperm.xlu1 %363, %v174_v1   ;;  %v205_v20 = vrot.slane %v173_v13, %v204_v15  ;;  %v214_v21 = vrot.slane %v173_v13, %v213_v16  ;;  %v234_v22 = vrot.slane %v173_v13, %v233_v17  ;;  %v225_v25 = vrot.slane %v173_v13, %v224_v19  ;;  %vm181_vm5 = vmand %vm177_vm1, %vm180_vm4 }
  0x2f   : > { %v182_v27 = vstv %s175_s4  ;;  %v188_v34 = vstv %s333_s5  ;;  %v246_v39 = vmul.f32 %v244_v31, %v242_v23 }
  0x30   : > { %vm183_vm2 = vcmp.le.f32.partialorder %v173_v13, %v182_v27  ;;  %vm189_vm3 = vcmp.le.f32.partialorder %v173_v13, %v188_v34 }
  0x31   : > { %v184_v36 = vsel %vm183_vm2, 1, %v402_v4  ;;  %v190_v41 = vsel %vm189_vm3, 1, %v402_v4  ;;  %v259_v44 = vrot.slane %v246_v39, %v204_v15 }
  0x32   : > { %365 = vset.pattern.permute.xlu1 %v403_v5  ;;  %v185_v40 = vrot.slane %v184_v36, 2  ;;  %v191_v45 = vrot.slane %v190_v41, 3 }
  0x33   : > { %228 = vperm.xlu1 %365, %v174_v1  }
  0x34   : > { %vm186_vm6 = vcmp.ne.s32.totalorder %v185_v40, 0  ;;  %vm192_vm8 = vcmp.ne.s32.totalorder %v191_v45, 0 }
  0x35   : > { %vm187_vm7 = vmand %vm181_vm5, %vm186_vm6 }
  0x36   : > { %vm193_vm9 = vmand %vm187_vm7, %vm192_vm8 }
  0x37   : > { %366 = vset.pattern.permute.xlu1 %v400_v2  ;;  %v269_v50 = vsel %vm193_vm9, 1, %v402_v4 }
  0x38   : > { %v273_v51 = vrot.slane %v269_v50, %v213_v16 }
  0x3a   : > { %vm274_vm10 = vcmp.eq.s32.totalorder %v273_v51, 1 }
  0x9a   : > { %v248_v6 = vpop.permute.xlu0 %247 }
  0x9b   : > { %v250_v7 = vsub.f32 %v174_v1, %v248_v6 }
  0x9d   : > { %252 = vrot.lane.b32.xlu0 %v250_v7, %s404_s30 }
  0xa1   : > { %219 = vperm.xlu0 %364, %v174_v1  }
  0xa5   : > { %367 = vset.pattern.permute.xlu0 %v400_v2 }
  0xa8   : > { %v200_v11 = vpop.permute.xlu1 %199 }
  0xa9   : > { %v206_v28 = vmin.f32 %v200_v11, %v205_v20 }
  0xad   : > { %v209_v14 = vpop.permute.xlu1 %208 }
  0xae   : > { %v215_v29 = vmax.f32 %v209_v14, %v214_v21 }
  0xb0   : > { %v216_v37 = vsub.f32 %v206_v28, %v215_v29 }
  0xb2   : > { %v229_v24 = vpop.permute.xlu1 %228  ;;  %v217_v42 = vmax.f32 %v216_v37, 0.0 }
  0xb3   : > { %v235_v30 = vmax.f32 %v229_v24, %v234_v22 }
 0x10f   : > { %v253_v8 = vpop.permute.xlu0 %252 }
 0x110   : > { %v255_v9 = vmul.f32 %v253_v8, %v250_v7 }
 0x112   : > { %262 = vperm.xlu1 %366, %v255_v9  }
 0x120   : > { %v220_v26 = vpop.permute.xlu0 %219 }
 0x121   : > { %v226_v32 = vmin.f32 %v220_v26, %v225_v25 }
 0x123   : > { %v236_v38 = vsub.f32 %v226_v32, %v235_v30 }
 0x125   : > { %v237_v43 = vmax.f32 %v236_v38, 0.0 }
 0x127   : > { %v238_v47 = vmul.f32 %v237_v43, %v217_v42 }
 0x191   : > { %v263_v46 = vpop.permute.xlu1 %262 }
 0x192   : > { %v265_v48 = vadd.f32 %v263_v46, %v259_v44 }
 0x194   : > { %v266_v49 = vsub.f32 %v265_v48, %v238_v47 }
 0x196   : > { %368 = vrcp.f32 %v266_v49 }
 0x1a0   : > { %v369_v52 = vpop.eup %368 }
 0x1a1   : > { %v268_v53 = vmul.f32 %v369_v52, %v238_v47 }
 0x1a3   : > { %v278_v54 = vsel %vm274_vm10, %v268_v53, -1.0 }
 0x1a4   : > { %280 = vmax.xlane.f32.xlu0 %v278_v54 }
 0x231   : > { %v281_v56 = vpop.xlane.xlu0 %280 }
 0x232   : > { %v282_v57 = vmax.f32 %v279_v55, %v281_v56 }
 0x234   : > { %284 = vst.msk [vmem:[%s489_s3] sm:$0xff] %vm283_vm11, %v282_v57 }
 0x235 PF: > { %s14_s12 = sadd.s32 1, %s395_s12  }
 0x236   : > { %p11_p2 = scmp.ge.s32.totalorder %s14_s12, 4  }
 0x238   :  { %13 = sbr.rel (!%p11_p2) target bundleno = 1 (0x1), region = 67 }
 0x23f   :  { %296 = vsyncpa [#allocation3], 1 }
 0x240   :  { %298 = vsyncpa [#allocation3 + $0x1], 1 }

</bundles_post_ra>
